<compile_context>
chip_gen: v7x
topology: tpu7x:2x2x1
jax: 0.10.0
libtpu: 0.0.40
codegen_flags: <defaults>
</compile_context>

<pallas_src>
import functools

import jax
import jax.numpy as jnp
import numpy as np
from jax.experimental import pallas as pl
from jax.experimental.pallas import tpu as pltpu


def _round_up(x: int, m: int) -> int:
    return ((x + m - 1) // m) * m


def _cubic_weights_np(in_size: int, out_size: int, a: float = -0.75) -> np.ndarray:
    """Dense (out_size, in_size) bicubic interpolation matrix.

    Matches torch.nn.functional.interpolate(mode='bicubic',
    align_corners=False, antialias=False): src coord = (i + 0.5) * s - 0.5,
    cubic convolution kernel with a = -0.75, indices clamped at the border.
    """
    scale = in_size / out_size
    i = np.arange(out_size, dtype=np.float64)
    x = (i + 0.5) * scale - 0.5
    x0 = np.floor(x)
    t = x - x0
    mat = np.zeros((out_size, in_size), dtype=np.float64)
    rows = np.arange(out_size)
    for m in range(4):  # taps at x0 - 1 + m
        d = np.abs(t + 1.0 - m)
        w = np.where(
            d <= 1.0,
            (a + 2.0) * d ** 3 - (a + 3.0) * d ** 2 + 1.0,
            np.where(d < 2.0,
                     a * d ** 3 - 5.0 * a * d ** 2 + 8.0 * a * d - 4.0 * a,
                     0.0),
        )
        idx = np.clip(x0.astype(np.int64) - 1 + m, 0, in_size - 1)
        np.add.at(mat, (rows, idx), w)  # clamped border taps accumulate
    return mat.astype(np.float32)


@functools.lru_cache(maxsize=64)
def _padded_weights(height, width, max_size, new_h, new_w, top, left,
                    tk, n_kb, tm, w_dtype_name):
    """Pad-folded (Rh_pad, RwT_pad) plus per-row-block band offsets, cached."""
    h_pad = tk * n_kb
    rh = _cubic_weights_np(height, new_h)            # (new_h, H)
    rw = _cubic_weights_np(width, new_w)             # (new_w, W)
    rh_pad = np.zeros((max_size, h_pad), np.float32)
    rh_pad[top:top + new_h, :height] = rh
    rwt_pad = np.zeros((width, max_size), np.float32)   # pre-transposed
    rwt_pad[:, left:left + new_w] = rw.T

    # Banded K ranges: each output-row block only needs the K blocks where its
    # Rh rows have non-zero taps (bicubic = 4-tap band), so finer row blocks
    # stream only ~their share of the image.
    n_i = max_size // tm
    los, widths = [], []
    for i in range(n_i):
        nz = np.nonzero(np.any(rh_pad[i * tm:(i + 1) * tm] != 0.0, axis=0))[0]
        lo, hi = (int(nz[0]) // tk, int(nz[-1]) // tk) if nz.size else (0, 0)
        los.append(lo)
        widths.append(hi - lo + 1)
    n_kg = max(widths)
    los = np.asarray([min(lo, n_kb - n_kg) for lo in los], np.int32)

    w_dtype = jnp.dtype(w_dtype_name)
    return (jnp.asarray(rh_pad, dtype=w_dtype),
            jnp.asarray(rwt_pad, dtype=jnp.float32),   # finalize matmul stays f32
            los, n_kg)


def _resize_pad_kernel(los_ref, rh_ref, img_ref, rwt_ref, o_ref, acc_ref, *,
                       tk, height, top, left, new_h, new_w, fill, compute_dtype):
    # Hoist ALL program_id / num_programs reads to the kernel top level; binding
    # them inside a pl.when branch is not supported by the interpreter.
    i = pl.program_id(0)
    k = pl.program_id(1)
    n_k = pl.num_programs(1)
    tm = o_ref.shape[0]
    out_row0 = i * tm

    @pl.when(k == 0)
    def _init():
        acc_ref[...] = jnp.zeros_like(acc_ref)

    # Stream a (tk, W) image slab in its stored dtype; cast on the VPU (hidden
    # under DMA) instead of paying a wrapper-side HBM pass.
    slab = img_ref[...].astype(compute_dtype)
    if height % tk != 0:
        # The image is NOT padded in HBM, so the last K block is partial; its
        # out-of-bounds rows hold undefined data -> zero them before the MXU
        # contraction (their Rh_pad columns are zero as well).
        src_row0 = (los_ref[i] + k) * tk
        rows = jax.lax.broadcasted_iota(jnp.int32, slab.shape, 0) + src_row0
        slab = jnp.where(rows < height, slab, jnp.zeros_like(slab))
    acc_ref[...] += jnp.dot(rh_ref[...], slab, preferred_element_type=jnp.float32)

    @pl.when(k == n_k - 1)
    def _finalize():
        # (tm, W) f32 acc @ (W, max_size) f32 RwT -> one lane-dense full store.
        res = jnp.dot(acc_ref[...], rwt_ref[...],
                      preferred_element_type=jnp.float32)
        if fill != 0.0:
            # Pad-folded matmul left zeros in the border; overwrite with fill.
            ms = o_ref.shape[1]
            rows = jax.lax.broadcasted_iota(jnp.int32, (tm, ms), 0) + out_row0
            cols = jax.lax.broadcasted_iota(jnp.int32, (tm, ms), 1)
            inside = ((rows >= top) & (rows < top + new_h)
                      & (cols >= left) & (cols < left + new_w))
            res = jnp.where(inside, res, jnp.float32(fill))
        o_ref[...] = res.astype(o_ref.dtype)


def _choose_k_tile(height: int, width: int, img_itemsize: int) -> int:
    """K tile over H so the double-buffered slab stays within ~16 MiB."""
    budget = 16 * 2 ** 20
    tk = budget // max(1, 2 * width * img_itemsize)
    return max(128, min(1024, (tk // 128) * 128))


def _choose_row_tile(max_size: int) -> int:
    """Largest multiple-of-8 divisor of max_size <= 256 (finer row blocks =>
    tighter bicubic bands, less MXU work, smaller accumulator, better megacore
    balance); small targets stay a single full block."""
    if max_size <= 256:
        return max_size
    for tm in range(256, 7, -8):
        if max_size % tm == 0:
            return tm
    return max_size


def resize_max_size(img: jnp.ndarray, max_size: int, fill: float = 0.0, *,
                    use_bf16_mxu: bool = False,
                    k_tile: int | None = None,
                    row_tile: int | None = None) -> jnp.ndarray:
    """JAX/Pallas equivalent of ResizeMaxSize(max_size).forward(img), (H, W) input."""
    if not isinstance(max_size, int):
        raise TypeError(f"Size should be int. Got {type(max_size)}")
    if img.ndim != 2:
        raise ValueError(f"Expected a 2-D (H, W) image, got shape {img.shape}")
    if not jnp.issubdtype(img.dtype, jnp.floating):
        # TODO(synk): integer (e.g. uint8) inputs need torchvision's round+clamp cast path.
        raise NotImplementedError("Only floating-point images are supported")

    height, width = int(img.shape[0]), int(img.shape[1])
    scale = max_size / float(max(height, width))
    if scale == 1.0:
        return img

    new_h = round(height * scale)
    new_w = round(width * scale)
    pad_h = max_size - new_h
    pad_w = max_size - new_w
    top, left = pad_h // 2, pad_w // 2

    compute_dtype = jnp.bfloat16 if use_bf16_mxu else jnp.float32
    w_isz = jnp.dtype(compute_dtype).itemsize
    img_isz = jnp.dtype(img.dtype).itemsize
    out_isz = img_isz

    # ---------------- tiling -------------------------------------------------
    if k_tile is not None:
        if k_tile % 8 != 0:
            raise ValueError("k_tile must be a multiple of 8")
        tk = k_tile
    else:
        tk = _choose_k_tile(height, width, img_isz)
    if height <= tk:
        tk = height                     # single full-height slab (always legal)
    n_kb = -(-height // tk)
    h_pad = tk * n_kb                   # weight-matrix column count only; image stays unpadded

    tm = _choose_row_tile(max_size) if row_tile is None else row_tile
    if max_size % tm != 0 or (tm != max_size and tm % 8 != 0):
        raise ValueError("row_tile must divide max_size and be a multiple of 8")
    n_i = max_size // tm

    # ---------------- operands ----------------------------------------------
    rh_pad, rwt_pad, los_np, n_kg = _padded_weights(
        height, width, max_size, new_h, new_w, top, left, tk, n_kb, tm,
        jnp.dtype(compute_dtype).name)
    los = jnp.asarray(los_np)

    kernel = functools.partial(
        _resize_pad_kernel, tk=tk, height=height, top=top, left=left,
        new_h=new_h, new_w=new_w, fill=float(fill), compute_dtype=compute_dtype)

    # ---------------- VMEM budget & cost hint --------------------------------
    working_set = (2 * tm * tk * w_isz              # Rh blocks (double-buffered)
                   + 2 * tk * width * img_isz       # image slabs (double-buffered)
                   + 2 * width * max_size * 4       # resident RwT (f32)
                   + 2 * tm * max_size * out_isz    # output blocks
                   + tm * width * 4)                # f32 accumulator scratch
    try:
        info = pltpu.get_tpu_info()
        phys = int(getattr(info, "vmem_capacity_bytes", 0)) or 128 * 2 ** 20
    except Exception:
        phys = 128 * 2 ** 20
    vmem_cap = max((phys * 3) // 4, 16 * 2 ** 20)   # ~48 MiB v7x, ~96 MiB v5e/v6e
    vmem_limit = int(min(max(2 * working_set, 16 * 2 ** 20), vmem_cap))

    cost = pl.CostEstimate(
        flops=2 * (max_size * n_kg * tk * width + max_size * width * max_size),
        transcendentals=0,
        bytes_accessed=int(n_i * n_kg * tk * width * img_isz
                           + max_size * h_pad * w_isz
                           + width * max_size * 4
                           + max_size * max_size * out_isz),
    )

    grid_spec = pltpu.PrefetchScalarGridSpec(
        num_scalar_prefetch=1,          # per-row-block band offsets in SMEM
        grid=(n_i, n_kg),
        in_specs=[
            # Rh_pad: row block i, banded K block los[i] + k
            pl.BlockSpec((tm, tk), lambda i, k, los: (i, los[i] + k)),
            # image row slab for the same banded K block (unpadded in HBM)
            pl.BlockSpec((tk, width), lambda i, k, los: (los[i] + k, 0)),
            # pre-transposed, pad-folded RwT: constant index_map -> fetched once
            pl.BlockSpec((width, max_size), lambda i, k, los: (0, 0)),
        ],
        out_specs=pl.BlockSpec((tm, max_size), lambda i, k, los: (i, 0)),
        scratch_shapes=[pltpu.VMEM((tm, width), jnp.float32)],
    )

    return pl.pallas_call(
        kernel,
        out_shape=jax.ShapeDtypeStruct((max_size, max_size), img.dtype),
        grid_spec=grid_spec,
        compiler_params=pltpu.CompilerParams(
            dimension_semantics=("parallel", "arbitrary"),
            vmem_limit_bytes=vmem_limit,
        ),
        cost_estimate=cost,
    )(los, rh_pad, img, rwt_pad)


def _reference_resize_max_size(img, max_size, fill=0.0):
    """Plain-JAX reference using the same separable bicubic weights."""
    h, w = int(img.shape[0]), int(img.shape[1])
    scale = max_size / float(max(h, w))
    if scale == 1.0:
        return img
    new_h, new_w = round(h * scale), round(w * scale)
    rh = jnp.asarray(_cubic_weights_np(h, new_h))
    rw = jnp.asarray(_cubic_weights_np(w, new_w))
    resized = rh @ img.astype(jnp.float32) @ rw.T
    pad_h, pad_w = max_size - new_h, max_size - new_w
    out = jnp.full((max_size, max_size), float(fill), jnp.float32)
    out = out.at[pad_h // 2:pad_h // 2 + new_h,
                 pad_w // 2:pad_w // 2 + new_w].set(resized)
    return out.astype(img.dtype)


if __name__ == "__main__":
    key = jax.random.PRNGKey(0)
    k1, k2 = jax.random.split(key)

    # Case 1: small portrait image, zero fill, single-block grid.
    img_small = jax.random.uniform(k1, (16, 8), dtype=jnp.float32)
    out1 = jax.block_until_ready(resize_max_size(img_small, 12, fill=0.0))
    ref1 = _reference_resize_max_size(img_small, 12, fill=0.0)
    assert out1.shape == (12, 12) and out1.dtype == jnp.float32
    assert jnp.allclose(out1, ref1, atol=1e-3, rtol=1e-3), \
        float(jnp.max(jnp.abs(out1 - ref1)))

    # Case 2: taller image, non-zero fill, forced multi-block grid: 2 parallel
    # row blocks x banded K blocks (scalar-prefetched offsets), UNPADDED image
    # with a partial last K block (300 % 128 != 0) handled in-kernel, the
    # accumulator init/finalize, and the pad-fold + fill mask.
    img_tall = jax.random.uniform(k2, (300, 40), dtype=jnp.float32)
    out2 = jax.block_until_ready(
        resize_max_size(img_tall, 32, fill=0.5, k_tile=128, row_tile=16))
    ref2 = _reference_resize_max_size(img_tall, 32, fill=0.5)
    assert out2.shape == (32, 32) and out2.dtype == jnp.float32
    assert jnp.allclose(out2, ref2, atol=1e-3, rtol=1e-3), \
        float(jnp.max(jnp.abs(out2 - ref2)))

    # Case 3: bf16 MXU path -- the cast happens in-kernel (no extra HBM pass),
    # the finalize matmul stays f32; looser tolerance vs the f32 reference.
    out3 = jax.block_until_ready(
        resize_max_size(img_small, 12, fill=0.0, use_bf16_mxu=True))
    assert out3.shape == (12, 12)
    assert jnp.allclose(out3, ref1, atol=5e-2, rtol=5e-2)

    print("KERNEL_OK")
</pallas_src>

<mosaic_0001>
module attributes {stable_mosaic.version = 11 : i64} {
  func.func @_resize_pad_kernel(%arg0: i32, %arg1: i32, %arg2: memref<1xi32, #tpu.memory_space<smem>>, %arg3: memref<12x16xf32, #tpu.memory_space<vmem>>, %arg4: memref<16x8xf32, #tpu.memory_space<vmem>>, %arg5: memref<8x12xf32, #tpu.memory_space<vmem>>, %arg6: memref<12x12xf32, #tpu.memory_space<vmem>>, %arg7: memref<12x8xf32, #tpu.memory_space<vmem>>) attributes {dimension_semantics = [#tpu.dimension_semantics<parallel>, #tpu.dimension_semantics<arbitrary>], iteration_bounds = array<i64: 1, 1>, scalar_prefetch = 1 : i64, scratch_operands = 1 : i64, tpu.core_type = #tpu.core_type<tc>, window_params = [{transform_indices = @transform_0, window_bounds = array<i64: 12, 16>}, {transform_indices = @transform_1, window_bounds = array<i64: 16, 8>}, {pipeline_mode = #tpu.pipeline_mode<synchronous>, transform_indices = @transform_2, window_bounds = array<i64: 8, 12>}, {transform_indices = @transform_3, window_bounds = array<i64: 12, 12>}]} {
    %c0_i32 = arith.constant 0 : i32
    %0 = arith.cmpi eq, %arg1, %c0_i32 : i32
    %1 = arith.extui %0 : i1 to i32
    %c0_i32_0 = arith.constant 0 : i32
    %2 = arith.cmpi ne, %1, %c0_i32_0 : i32
    scf.if %2 {
      %cst_10 = arith.constant 0.000000e+00 : f32
      %12 = vector.broadcast %cst_10 : f32 to vector<12x8xf32>
      %c0_11 = arith.constant 0 : index
      %c0_12 = arith.constant 0 : index
      %13 = vector.load %arg7[%c0_11, %c0_12] : memref<12x8xf32, #tpu.memory_space<vmem>>, vector<12x8xf32>
      tpu.vector_store %arg7[%c0_11, %c0_12], %12 {strides = array<i32>} : memref<12x8xf32, #tpu.memory_space<vmem>>, vector<12x8xf32>,
    } else {
    }
    %c0 = arith.constant 0 : index
    %c0_1 = arith.constant 0 : index
    %3 = vector.load %arg4[%c0, %c0_1] : memref<16x8xf32, #tpu.memory_space<vmem>>, vector<16x8xf32>
    %c0_2 = arith.constant 0 : index
    %c0_3 = arith.constant 0 : index
    %4 = vector.load %arg7[%c0_2, %c0_3] : memref<12x8xf32, #tpu.memory_space<vmem>>, vector<12x8xf32>
    %c0_4 = arith.constant 0 : index
    %c0_5 = arith.constant 0 : index
    %5 = vector.load %arg3[%c0_4, %c0_5] : memref<12x16xf32, #tpu.memory_space<vmem>>, vector<12x16xf32>
    %cst = arith.constant dense<0.000000e+00> : vector<12x8xf32>
    %6 = tpu.matmul %5, %3, %cst {dimension_numbers = #tpu.dot_dimension_numbers<[1], [0], [0], [1], [0, 0, 1, 1], [], []>} : vector<12x16xf32>, vector<16x8xf32>, vector<12x8xf32> -> vector<12x8xf32>
    %7 = arith.addf %4, %6 : vector<12x8xf32>
    %c0_6 = arith.constant 0 : index
    %c0_7 = arith.constant 0 : index
    %8 = vector.load %arg7[%c0_6, %c0_7] : memref<12x8xf32, #tpu.memory_space<vmem>>, vector<12x8xf32>
    tpu.vector_store %arg7[%c0_6, %c0_7], %7 {strides = array<i32>} : memref<12x8xf32, #tpu.memory_space<vmem>>, vector<12x8xf32>,
    %c0_i32_8 = arith.constant 0 : i32
    %9 = arith.cmpi eq, %arg1, %c0_i32_8 : i32
    %10 = arith.extui %9 : i1 to i32
    %c0_i32_9 = arith.constant 0 : i32
    %11 = arith.cmpi ne, %10, %c0_i32_9 : i32
    scf.if %11 {
      %c0_10 = arith.constant 0 : index
      %c0_11 = arith.constant 0 : index
      %12 = vector.load %arg7[%c0_10, %c0_11] : memref<12x8xf32, #tpu.memory_space<vmem>>, vector<12x8xf32>
      %c0_12 = arith.constant 0 : index
      %c0_13 = arith.constant 0 : index
      %13 = vector.load %arg5[%c0_12, %c0_13] : memref<8x12xf32, #tpu.memory_space<vmem>>, vector<8x12xf32>
      %cst_14 = arith.constant dense<0.000000e+00> : vector<12x12xf32>
      %14 = tpu.matmul %12, %13, %cst_14 {dimension_numbers = #tpu.dot_dimension_numbers<[1], [0], [0], [1], [0, 0, 1, 1], [], []>} : vector<12x8xf32>, vector<8x12xf32>, vector<12x12xf32> -> vector<12x12xf32>
      %c0_15 = arith.constant 0 : index
      %c0_16 = arith.constant 0 : index
      %15 = vector.load %arg6[%c0_15, %c0_16] : memref<12x12xf32, #tpu.memory_space<vmem>>, vector<12x12xf32>
      tpu.vector_store %arg6[%c0_15, %c0_16], %14 {strides = array<i32>} : memref<12x12xf32, #tpu.memory_space<vmem>>, vector<12x12xf32>,
    } else {
    }
    return
  }
  func.func @transform_0(%arg0: i32, %arg1: i32, %arg2: memref<1xi32, #tpu.memory_space<smem>>) -> (i32, i32) {
    %0 = arith.index_cast %arg0 : i32 to index
    %1 = memref.load %arg2[%0] : memref<1xi32, #tpu.memory_space<smem>>
    %2 = arith.addi %1, %arg1 : i32
    %c0_i32 = arith.constant 0 : i32
    return %arg0, %2 : i32, i32
  }
  func.func @transform_1(%arg0: i32, %arg1: i32, %arg2: memref<1xi32, #tpu.memory_space<smem>>) -> (i32, i32) {
    %0 = arith.index_cast %arg0 : i32 to index
    %1 = memref.load %arg2[%0] : memref<1xi32, #tpu.memory_space<smem>>
    %2 = arith.addi %1, %arg1 : i32
    %c0_i32 = arith.constant 0 : i32
    %c0_i32_0 = arith.constant 0 : i32
    return %2, %c0_i32 : i32, i32
  }
  func.func @transform_2(%arg0: i32, %arg1: i32, %arg2: memref<1xi32, #tpu.memory_space<smem>>) -> (i32, i32) {
    %c0_i32 = arith.constant 0 : i32
    %c0_i32_0 = arith.constant 0 : i32
    %c0_i32_1 = arith.constant 0 : i32
    return %c0_i32, %c0_i32_0 : i32, i32
  }
  func.func @transform_3(%arg0: i32, %arg1: i32, %arg2: memref<1xi32, #tpu.memory_space<smem>>) -> (i32, i32) {
    %c0_i32 = arith.constant 0 : i32
    %c0_i32_0 = arith.constant 0 : i32
    return %arg0, %c0_i32 : i32, i32
  }
}

</mosaic_0001>

<bundles_post_ra>
// kernel: tpu_custom_call.1
= control target key start
LH: loop header
LB: loop body
LE: loop exit
PB: predicated region body
PF: predicated region fallthrough
CT: control target
= control target key end

     0   :  { %vm72_vm0 = vcmask 60416   ;;  %v345_v0 = vmov 0.0   ;;  %s410_s0 = inlined_call_operand.<no memory space> [shape: s32[1], index: 0, kind: input, shape index: {}]   ;;  %s411_s1 = inlined_call_operand.vmem [shape: f32[12,16], index: 1, kind: input, shape index: {}]   ;;  %s412_s2 = inlined_call_operand.vmem [shape: f32[16,8], index: 2, kind: input, shape index: {}]   ;;  %s413_s3 = inlined_call_operand.vmem [shape: f32[8,12], index: 3, kind: input, shape index: {}]   ;;  %s414_s4 = inlined_call_operand.hbm [shape: f32[12,12], index: 4, kind: output, shape index: {}]  }
   0x1   :  { %s288_s17 = sshll.u32 %s410_s0, 1  ;;  %p50_p0 = scmp.lt.s32.totalorder %s410_s0, 0  ;;  %73 = vst.msk [vmem:[#allocation2 + $0x8] sm:$0xf] %vm72_vm0, %v345_v0 }
   0x2   :  { %p59_p1 = scmp.lt.s32.totalorder %s288_s17, 1 }
   0x3   :  { %10 = vsyncpa [#allocation6], 0  ;;  %s416_s0 = smov (!%p50_p0, %s410_s0), 0  ;;  %vm80_vm1 = vcmask 130048   ;;  %vm70_vm2 = vcmask 64512   ;;  %v173_v6 = vld [vmem:[%s413_s3] sm:$0xff] }
   0x4   :  { %s418_s17 = smov (!%p59_p1, %s288_s17), 1  ;;  %s287_s22 = sshll.u32 %s416_s0, 3  ;;  %71 = vst.msk [vmem:[#allocation2] sm:$0xff] %vm70_vm2, %v345_v0  ;;  %308 = vmatprep.subr.mxu1 %v173_v6  ;;  %vm257_vm3 = vcmask 93184   ;;  %vm255_vm4 = vcmask 97280  }
   0x5   :  { %s289_s23 = sshll.u32 %s418_s17, 3  ;;  %s53_s26 = scalar_lea.vmem %s411_s1, %s287_s22  ;;  %309 = vmatpush3.msra.mxu1 %v173_v6 }
   0x6   :  { %s62_s29 = scalar_lea.vmem %s412_s2, %s289_s23  ;;  %v78_v1 = vld [vmem:[%s53_s26] sm:$0xff]  ;;  %v79_v5 = vld [vmem:[%s53_s26 + $0x8] sm:$0xf]  ;;  %s346_s1 = smov [#allocation5]  }
   0x7   :  { %v74_v2 = vld [vmem:[%s62_s29] sm:$0xff]  ;;  %v75_v3 = vld [vmem:[%s62_s29 + $0x8] sm:$0xff]  ;;  %305 = vmatprep.mubr.msk.f32.mxu0 %vm80_vm1, %v78_v1  ;;  %s264_s2 = sshll.u32 %s346_s1, 4  ;;  %s265_s2 = int_to_ptr.vmem [resolvable:$true] %s264_s2 }
   0x8   :  { %v313_v4 = vpack.c.bf16 %v75_v3, %v74_v2  ;;  %v77_v7 = vld [vmem:[#allocation2 + $0x8] sm:$0xf]  ;;  %s321_s3 = scalar_lea.vmem %s265_s2, 256  ;;  %p326_p3 = scmp.lt.s32.totalorder %s265_s2, %s265_s2 }
   0x9   :  { %p322_p2 = scmp.ne.s32.totalorder %s265_s2, %s321_s3  ;;  %p327_p4 = scmp.lt.s32.totalorder %s321_s3, %s321_s3 }
   0xa   :  { %314 = vmatprep.subr.bf16.mxu0 %v313_v4 }
   0xb   :  { %316 = vmatpush3.bf16.msra.mxu0 %v313_v4  ;;  %v76_v8 = vld [vmem:[#allocation2] sm:$0xff]  ;;  %p328_p5 = por %p327_p4, %p326_p3 }
   0xd   :  { %p329_p6 = pnand %p328_p5, %p322_p2 }
   0xe   :  { %306 = vmatmul.mubr.msk.f32.vlgmr.msra.gmra.mrb[0].mxu0 %vm80_vm1, %v79_v5 }
  0xe1   :  { %v307_v9 = vpop.f32.mrb[0].mxu0 }
  0xe2   :  { %v163_v10 = vadd.f32 %v307_v9, %v77_v7  ;;  %v153_v11 = vpop.f32.mrb[1].mxu0 }
  0xe3   :  { %v162_v12 = vadd.f32 %v153_v11, %v76_v8 }
  0xe4   :  { %167 = vst.msk [vmem:[#allocation2 + $0x8] sm:$0xf] %vm72_vm0, %v163_v10 }
  0xe5   :  { %165 = vst.msk [vmem:[#allocation2] sm:$0xff] %vm70_vm2, %v162_v12 }
  0xeb   :  { %v172_v14 = vld [vmem:[#allocation2 + $0x8] sm:$0xf] }
  0xec   :  { %v171_v13 = vld [vmem:[#allocation2] sm:$0xff] }
  0xed   :  { %310 = vmatprep.mubr.msk.f32.mxu1 %vm70_vm2, %v171_v13 }
  0xee   :  { %311 = vmatmul.mubr.msk.f32.vlgmr.msra.gmra.mrb[0].mxu1 %vm70_vm2, %v172_v14 }
 0x1c1   :  { %v312_v15 = vpop.f32.mrb[0].mxu1 }
 0x1c2   :  { %258 = vst.msk [vmem:[#allocation5 + $0x8] sm:$0xf] %vm257_vm3, %v312_v15  ;;  %v246_v16 = vpop.f32.mrb[1].mxu1 }
 0x1c3   :  { %256 = vst.msk [vmem:[#allocation5] sm:$0xff] %vm255_vm4, %v246_v16 }
 0x1c4   :  { %332 = shalt.err (!%p329_p6)
}
 0x1c5   :  { %s333_s7 = scalar_lea.hbm %s414_s4, 256 }
 0x1c6   :  { %p334_p7 = scmp.ne.s32.totalorder %s414_s4, %s333_s7  ;;  %p337_p8 = scmp.lt.u32.totalorder %s333_s7, %s414_s4 }
 0x1c8   :  { %p339_p9 = pnand %p337_p8, %p334_p7 }
 0x1ca   :  { %342 = shalt.err (!%p339_p9)
}
 0x1cb   :  { %s347_s12 = smov 128   ;;  %s348_s13 = smov 8  }
 0x1cc   :  { %270 = dma.vmem_to_hbm [thread:$0]  %s265_s2, 256, %s414_s4, [#allocation6], %s347_s12, %s347_s12, %s348_s13  }
 0x1cd   :  { %343 = dma.done.wait [#allocation6], 256  }
 0x1ce   :  { %344 = vsyncadd [#allocation6], 4294967040 }
 0x1cf   :  { %274 = vsyncpa [#allocation6], 1 }

</bundles_post_ra>
